<compile_context>
chip_gen: v5e
topology: v5e:2x2
jax: 0.10.0
libtpu: 0.0.40
codegen_flags: <defaults>
</compile_context>

<pallas_src>
import math

import numpy as np
import jax
import jax.numpy as jnp
from jax.experimental import pallas as pl
from jax.experimental.pallas import tpu as pltpu


# ----------------------------------------------------------------------------
# Buffer construction (equivalent of PositionalEncoding.__init__)
# ----------------------------------------------------------------------------
def make_pe_buffer(d_model: int, max_len: int = 5000, dtype=jnp.float32) -> jnp.ndarray:
    """Sinusoidal positional-encoding table of shape (max_len_padded, d_model).

    Stored padded up to a multiple of 128 rows (extra rows are valid sinusoids
    and never selected for S <= max_len) so the lane-folding reshape in the
    forward pass is always exact.  Store in the model dtype (e.g. bf16) so the
    forward pass never has to cast it per call.
    Odd d_model is handled by truncating the cosine half (the canonical
    PyTorch snippet errors for odd d_model).
    """
    max_len_padded = ((max_len + 127) // 128) * 128
    position = np.arange(0, max_len_padded, dtype=np.float32)[:, None]        # (L, 1)
    div_term = np.exp(
        np.arange(0, d_model, 2, dtype=np.float32) * (-np.log(10000.0) / d_model)
    )
    pe = np.zeros((max_len_padded, d_model), dtype=np.float32)
    pe[:, 0::2] = np.sin(position * div_term)[:, : (d_model + 1) // 2]
    pe[:, 1::2] = np.cos(position * div_term)[:, : d_model // 2]
    return jnp.asarray(pe, dtype=dtype)


# ----------------------------------------------------------------------------
# Pallas kernel: tiled, lane-dense broadcast add of the positional table
# ----------------------------------------------------------------------------
def pe_add_kernel(x_ref, pe_ref, o_ref):
    # x/o blocks: (bb, tr, lane); pe block: (1, tr, lane).  The add broadcasts
    # pe over the folded-batch leading dim (cheap: no cross-lane movement).
    o_ref[...] = x_ref[...] + pe_ref[...]


def positional_encoding_forward(x: jnp.ndarray, pe: jnp.ndarray) -> jnp.ndarray:
    """x: (B, S, D); pe: (max_len_padded, D) from make_pe_buffer.

    Returns x + pe[None, :S, :].
    """
    B, S, D = x.shape
    max_rows, pe_d = pe.shape
    if pe_d != D:
        raise ValueError(f"pe d_model ({pe_d}) does not match x d_model ({D})")
    if S > max_rows:
        raise ValueError(f"sequence length {S} exceeds positional table rows {max_rows}")
    if pe.dtype != x.dtype:
        # Fallback only: store the table in the model dtype at init (see
        # make_pe_buffer) so this per-call convert never runs under jit.
        pe = pe.astype(x.dtype)

    # Fold g consecutive sequence rows into the lane dim so the last dim is a
    # multiple of 128.  g divides 128 and max_rows is a multiple of 128, so
    # the pe reshape below is always exact.
    g = 128 // math.gcd(D, 128)
    s_pad = ((S + g - 1) // g) * g           # pad S up instead of masked stores
    s_rows = s_pad // g
    lane = g * D
    itemsize = jnp.dtype(x.dtype).itemsize

    if s_rows < 8:
        # Tiny input: pallas_call fixed cost dominates; let XLA do the add.
        return x + pe[None, :S, :]

    x_in = x if s_pad == S else jnp.pad(x, ((0, 0), (0, s_pad - S), (0, 0)))
    x_f = x_in.reshape(B, s_rows, lane)          # free (contiguous) reshape
    pe_f = pe.reshape(1, max_rows // g, lane)    # full table; rows picked by index_map

    # Block sizing: target ~4 MiB per operand block.  x/out double-buffered,
    # pe single-buffered -> ~5 blocks (~20 MiB) total, under the 40 MiB limit
    # below and v7x's 64 MiB physical VMEM.
    target_block_bytes = 4 << 20
    row_bytes = lane * itemsize
    slab_bytes = s_rows * row_bytes              # one batch element, all rows

    if slab_bytes >= target_block_bytes:
        # Long sequence: tile the folded sequence axis, one batch element/block.
        bb = 1
        tr = max(8, (target_block_bytes // row_bytes) // 8 * 8)
        if B == 1 and s_rows >= 16 and pl.cdiv(s_rows, tr) < 2:
            # Keep >= 2 row tiles so both v7x TensorCores get work.
            tr = max(8, (((s_rows + 1) // 2) + 7) // 8 * 8)
    else:
        # Short sequence: (nearly) whole folded slab per block; fold batch
        # elements into the block to amortize the ~0.35 us per-grid-step cost.
        tr = s_rows if s_rows % 8 == 0 else (s_rows // 8) * 8   # keep 8-aligned
        bb = max(1, min(B, target_block_bytes // max(slab_bytes, 1)))

    grid = (pl.cdiv(s_rows, tr), pl.cdiv(B, bb))  # row axis outer -> pe tile is
                                                  # not refetched across batch

    out_f = pl.pallas_call(
        pe_add_kernel,
        out_shape=jax.ShapeDtypeStruct((B, s_rows, lane), x.dtype),
        grid_spec=pltpu.PrefetchScalarGridSpec(
            num_scalar_prefetch=0,
            grid=grid,
            in_specs=[
                pl.BlockSpec((bb, tr, lane), lambda r, b: (b, r, 0)),    # x
                pl.BlockSpec((1, tr, lane), lambda r, b: (0, r, 0),      # pe
                             pipeline_mode=pl.Buffered(1)),              # single-buffer
            ],
            out_specs=pl.BlockSpec((bb, tr, lane), lambda r, b: (b, r, 0)),
        ),
        compiler_params=pltpu.CompilerParams(
            dimension_semantics=("parallel", "parallel"),
            vmem_limit_bytes=40 * 1024 * 1024,
        ),
    )(x_f, pe_f)

    out = out_f.reshape(B, s_pad, D)
    return out if s_pad == S else out[:, :S, :]


if __name__ == "__main__":
    B, D = 2, 32
    key = jax.random.PRNGKey(0)
    pe = make_pe_buffer(d_model=D, max_len=5000, dtype=jnp.float32)
    fwd = jax.jit(positional_encoding_forward)

    # Main case (exercises the Pallas path with lane folding + batch folding).
    S = 128
    x = jax.random.normal(key, (B, S, D), dtype=jnp.float32)
    out = jax.block_until_ready(fwd(x, pe))
    ref = x + pe[None, :S, :]
    np.testing.assert_allclose(np.asarray(out), np.asarray(ref), rtol=1e-6, atol=1e-6)

    # Ragged case (S not a multiple of the lane-fold factor -> pad path).
    S2 = 130
    x2 = jax.random.normal(jax.random.PRNGKey(0), (B, S2, D), dtype=jnp.float32)
    out2 = jax.block_until_ready(fwd(x2, pe))
    ref2 = x2 + pe[None, :S2, :]
    np.testing.assert_allclose(np.asarray(out2), np.asarray(ref2), rtol=1e-6, atol=1e-6)

    print("KERNEL_OK")
</pallas_src>

<mosaic_0001>
module attributes {stable_mosaic.version = 11 : i64} {
  func.func @pe_add_kernel(%arg0: i32, %arg1: i32, %arg2: memref<2x32x128xf32, #tpu.memory_space<vmem>>, %arg3: memref<1x32x128xf32, #tpu.memory_space<vmem>>, %arg4: memref<2x32x128xf32, #tpu.memory_space<vmem>>) attributes {dimension_semantics = [#tpu.dimension_semantics<parallel>, #tpu.dimension_semantics<parallel>], iteration_bounds = array<i64: 1, 1>, scalar_prefetch = 0 : i64, scratch_operands = 0 : i64, tpu.core_type = #tpu.core_type<tc>, window_params = [{transform_indices = @transform_0, window_bounds = array<i64: 2, 32, 128>}, {pipeline_mode = #tpu.pipeline_mode<synchronous>, transform_indices = @transform_1, window_bounds = array<i64: 1, 32, 128>}, {transform_indices = @transform_2, window_bounds = array<i64: 2, 32, 128>}]} {
    %c0 = arith.constant 0 : index
    %c0_0 = arith.constant 0 : index
    %c0_1 = arith.constant 0 : index
    %0 = vector.load %arg2[%c0, %c0_0, %c0_1] : memref<2x32x128xf32, #tpu.memory_space<vmem>>, vector<2x32x128xf32>
    %c0_2 = arith.constant 0 : index
    %c0_3 = arith.constant 0 : index
    %c0_4 = arith.constant 0 : index
    %1 = vector.load %arg3[%c0_2, %c0_3, %c0_4] : memref<1x32x128xf32, #tpu.memory_space<vmem>>, vector<1x32x128xf32>
    %2 = vector.broadcast %1 : vector<1x32x128xf32> to vector<2x32x128xf32>
    %3 = arith.addf %0, %2 : vector<2x32x128xf32>
    %c0_5 = arith.constant 0 : index
    %c0_6 = arith.constant 0 : index
    %c0_7 = arith.constant 0 : index
    %4 = vector.load %arg4[%c0_5, %c0_6, %c0_7] : memref<2x32x128xf32, #tpu.memory_space<vmem>>, vector<2x32x128xf32>
    tpu.vector_store %arg4[%c0_5, %c0_6, %c0_7], %3 {strides = array<i32>} : memref<2x32x128xf32, #tpu.memory_space<vmem>>, vector<2x32x128xf32>,
    return
  }
  func.func @transform_0(%arg0: i32, %arg1: i32) -> (i32, i32, i32) {
    %c0_i32 = arith.constant 0 : i32
    %c0_i32_0 = arith.constant 0 : i32
    return %arg1, %arg0, %c0_i32 : i32, i32, i32
  }
  func.func @transform_1(%arg0: i32, %arg1: i32) -> (i32, i32, i32) {
    %c0_i32 = arith.constant 0 : i32
    %c0_i32_0 = arith.constant 0 : i32
    %c0_i32_1 = arith.constant 0 : i32
    return %c0_i32, %arg0, %c0_i32_0 : i32, i32, i32
  }
  func.func @transform_2(%arg0: i32, %arg1: i32) -> (i32, i32, i32) {
    %c0_i32 = arith.constant 0 : i32
    %c0_i32_0 = arith.constant 0 : i32
    return %arg1, %arg0, %c0_i32 : i32, i32, i32
  }
}

</mosaic_0001>

<bundles_post_ra>
// kernel: positional_encoding_forward.1
= control target key start
LH: loop header
LB: loop body
LE: loop exit
PB: predicated region body
PF: predicated region fallthrough
CT: control target
= control target key end

     0   :  { %s118_s0 = inlined_call_operand.vmem [shape: f32[2,32,128], index: 0, kind: input, shape index: {}]   ;;  %s119_s1 = inlined_call_operand.vmem [shape: f32[1,1280,128], index: 1, kind: input, shape index: {}]   ;;  %s120_s2 = inlined_call_operand.vmem [shape: f32[2,32,128], index: 2, kind: output, shape index: {}]  }
   0x1   :  { %v11_v0 = vld [vmem:[%s118_s0] sm:$0xff]  ;;  %v12_v2 = vld [vmem:[%s118_s0 + $0x8] sm:$0xff]  ;;  %v13_v5 = vld [vmem:[%s118_s0 + $0x10] sm:$0xff] }
   0x2   :  { %v19_v1 = vld [vmem:[%s119_s1] sm:$0xff]  ;;  %v20_v4 = vld [vmem:[%s119_s1 + $0x8] sm:$0xff]  ;;  %v21_v6 = vld [vmem:[%s119_s1 + $0x10] sm:$0xff] }
   0x3   :  { %v23_v3 = vadd.f32 %v19_v1, %v11_v0  ;;  %v24_v7 = vadd.f32 %v20_v4, %v12_v2  ;;  %v25_v8 = vadd.f32 %v21_v6, %v13_v5  ;;  %v14_v9 = vld [vmem:[%s118_s0 + $0x18] sm:$0xff]  ;;  %v15_v11 = vld [vmem:[%s118_s0 + $0x20] sm:$0xff]  ;;  %v16_v14 = vld [vmem:[%s118_s0 + $0x28] sm:$0xff] }
   0x4   :  { %v22_v10 = vld [vmem:[%s119_s1 + $0x18] sm:$0xff]  ;;  %v27_v13 = vadd.f32 %v19_v1, %v15_v11  ;;  %v17_v15 = vld [vmem:[%s118_s0 + $0x30] sm:$0xff]  ;;  %v28_v17 = vadd.f32 %v20_v4, %v16_v14 }
   0x5   :  { %31 = vst [vmem:[%s120_s2] sm:$0xff] %v23_v3  ;;  %v26_v12 = vadd.f32 %v22_v10, %v14_v9  ;;  %v18_v16 = vld [vmem:[%s118_s0 + $0x38] sm:$0xff]  ;;  %v29_v18 = vadd.f32 %v21_v6, %v17_v15 }
   0x6   :  { %32 = vst [vmem:[%s120_s2 + $0x8] sm:$0xff] %v24_v7  ;;  %v30_v19 = vadd.f32 %v22_v10, %v18_v16 }
   0x7   :  { %33 = vst [vmem:[%s120_s2 + $0x10] sm:$0xff] %v25_v8 }
   0x8   :  { %34 = vst [vmem:[%s120_s2 + $0x18] sm:$0xff] %v26_v12 }
   0x9   :  { %35 = vst [vmem:[%s120_s2 + $0x20] sm:$0xff] %v27_v13 }
   0xa   :  { %36 = vst [vmem:[%s120_s2 + $0x28] sm:$0xff] %v28_v17 }
   0xb   :  { %37 = vst [vmem:[%s120_s2 + $0x30] sm:$0xff] %v29_v18 }
   0xc   :  { %38 = vst [vmem:[%s120_s2 + $0x38] sm:$0xff] %v30_v19 }

</bundles_post_ra>
